<compile_context>
chip_gen: v7x
topology: tpu7x:2x2x1
jax: 0.10.0
libtpu: 0.0.40
codegen_flags: <defaults>
</compile_context>

<pallas_src>
import functools

import jax
import jax.numpy as jnp
from jax.experimental import pallas as pl
from jax.experimental.pallas import tpu as pltpu


# ---------------------------------------------------------------------------
# Kernels
# ---------------------------------------------------------------------------
def _layernorm_kernel(alpha_ref, bias_ref, x_ref, o_ref, *, epsilon, inv_nm1):
    # x_ref block: (row_tile, H). Reduction axis (H) lives on the lanes.
    x = x_ref[...].astype(jnp.float32)
    n = x.shape[-1]

    # One-pass moments: sum(x) and sum(x*x) are independent cross-lane
    # reductions that can both be in flight on the XLUs.
    s = jnp.sum(x, axis=-1, keepdims=True)
    sq = jnp.sum(x * x, axis=-1, keepdims=True)
    mean = s * (1.0 / n)
    var = (sq - n * mean * mean) * inv_nm1      # torch.std: unbiased (n-1)
    var = jnp.maximum(var, 0.0)                 # guard cancellation
    std = jnp.sqrt(var)

    alpha = alpha_ref[0]
    bias = bias_ref[0]

    # Per-row scale: alpha / (eps + std). Shape (row_tile, 1) -> negligible
    # cost, exact (no approx reciprocal) for tight numerical agreement.
    scale = alpha / (epsilon + std)
    y = (x - mean) * scale + bias
    o_ref[...] = y.astype(o_ref.dtype)


def _residual_add_kernel(x_ref, y_ref, o_ref):
    # out = x + dropout(y); dropout is identity in eval / p=0 mode.
    # TODO(synk): training-mode nn.Dropout masking (PRNG) not implemented here;
    # eval-mode semantics are used, matching module.eval() / dropout=0.
    o_ref[...] = (x_ref[...] + y_ref[...]).astype(o_ref.dtype)


# ---------------------------------------------------------------------------
# Tiling helpers / wrappers
# ---------------------------------------------------------------------------
_VMEM_LIMIT_BYTES = 64 * 1024 * 1024        # explicit scoped-VMEM limit
_BLOCK_BUDGET_BYTES = 24 * 1024 * 1024      # budget for double-buffered blocks


def _row_align(itemsize):
    # Sublane packing: 8 rows per vreg for 32-bit, 16 for 16-bit, 32 for 8-bit.
    return max(8, 32 // max(int(itemsize), 1))


def _pick_row_tile(rows, hidden, itemsize, n_arrays,
                   budget_bytes=_BLOCK_BUDGET_BYTES):
    # bytes for pipelined blocks ~= 2 (double buffer) * n_arrays * tile * H * itemsize
    align = _row_align(itemsize)
    per_row = 2 * n_arrays * hidden * itemsize
    max_rows = max(align, budget_bytes // max(per_row, 1))
    rows_up = ((rows + align - 1) // align) * align
    tile = min(1024, max_rows, rows_up)
    tile = max(align, (tile // align) * align)
    return int(tile)


def layer_norm_pallas(x, alpha, bias, epsilon=1e-6, row_tile=None):
    """x: (..., H). alpha, bias: shape (1,) scalars (as in the torch module)."""
    orig_shape = x.shape
    H = orig_shape[-1]
    x2 = x.reshape(-1, H)
    R = x2.shape[0]

    if row_tile is None:
        row_tile = _pick_row_tile(R, H, x2.dtype.itemsize, n_arrays=2)

    grid = pl.cdiv(R, row_tile)

    kernel = functools.partial(
        _layernorm_kernel, epsilon=float(epsilon), inv_nm1=1.0 / float(H - 1)
    )

    out = pl.pallas_call(
        kernel,
        out_shape=jax.ShapeDtypeStruct((R, H), x.dtype),
        grid=(grid,),
        in_specs=[
            # scalar params live in SMEM, whole array each step
            pl.BlockSpec(memory_space=pltpu.MemorySpace.SMEM),
            pl.BlockSpec(memory_space=pltpu.MemorySpace.SMEM),
            pl.BlockSpec((row_tile, H), lambda i: (i, 0)),
        ],
        out_specs=pl.BlockSpec((row_tile, H), lambda i: (i, 0)),
        compiler_params=pltpu.CompilerParams(
            dimension_semantics=("parallel",),
            vmem_limit_bytes=_VMEM_LIMIT_BYTES,
        ),
    )(alpha, bias, x2)

    return out.reshape(orig_shape)


def residual_add_pallas(x, y, row_tile=None):
    """Elementwise x + y (the residual add), tiled over flattened rows."""
    orig_shape = x.shape
    H = orig_shape[-1]
    x2 = x.reshape(-1, H)
    y2 = y.reshape(-1, H)
    R = x2.shape[0]

    if row_tile is None:
        row_tile = _pick_row_tile(R, H, x2.dtype.itemsize, n_arrays=3)

    grid = pl.cdiv(R, row_tile)

    out = pl.pallas_call(
        _residual_add_kernel,
        out_shape=jax.ShapeDtypeStruct((R, H), x.dtype),
        grid=(grid,),
        in_specs=[
            pl.BlockSpec((row_tile, H), lambda i: (i, 0)),
            pl.BlockSpec((row_tile, H), lambda i: (i, 0)),
        ],
        out_specs=pl.BlockSpec((row_tile, H), lambda i: (i, 0)),
        compiler_params=pltpu.CompilerParams(
            dimension_semantics=("parallel",),
            vmem_limit_bytes=_VMEM_LIMIT_BYTES,
        ),
    )(x2, y2)

    return out.reshape(orig_shape)


def residual_connection(x, sublayer, alpha, bias, epsilon=1e-6, dropout_rate=0.0):
    """ResidualConnection.forward: x + dropout(sublayer(norm(x))).

    `sublayer` is an arbitrary JAX callable applied between the two kernels.
    Dropout uses eval-mode (identity) semantics.
    """
    normed = layer_norm_pallas(x, alpha, bias, epsilon)
    sub_out = sublayer(normed)
    return residual_add_pallas(x, sub_out)


# ---------------------------------------------------------------------------
# Demo / correctness check
# ---------------------------------------------------------------------------
if __name__ == "__main__":
    key = jax.random.PRNGKey(0)
    B, S, H = 2, 8, 128  # H multiple of 128 -> lane-dense, unmasked stores
    x = jax.random.normal(key, (B, S, H), dtype=jnp.float32)

    # Parameters matching nn.Parameter(torch.ones(1)) / torch.zeros(1)
    alpha = jnp.ones((1,), dtype=jnp.float32)
    bias = jnp.zeros((1,), dtype=jnp.float32)
    epsilon = 1e-6

    # Simple deterministic sublayer (stand-in for the wrapped sublayer module)
    sublayer = lambda t: t * 1.5 + 0.25

    y = residual_connection(x, sublayer, alpha, bias, epsilon, dropout_rate=0.0)
    y = jax.block_until_ready(y)

    # Pure-JAX reference (torch.std is unbiased; eps added to std; dropout eval)
    mean = jnp.mean(x, axis=-1, keepdims=True)
    std = jnp.sqrt(jnp.sum((x - mean) ** 2, axis=-1, keepdims=True) / (H - 1))
    normed_ref = alpha * (x - mean) / (epsilon + std) + bias
    y_ref = x + sublayer(normed_ref)

    assert jnp.allclose(y, y_ref, atol=1e-4, rtol=1e-4), "mismatch vs reference"
    print("KERNEL_OK")
</pallas_src>

<mosaic_0001>
module attributes {stable_mosaic.version = 11 : i64} {
  func.func @_layernorm_kernel(%arg0: i32, %arg1: memref<1xf32, #tpu.memory_space<smem>>, %arg2: memref<1xf32, #tpu.memory_space<smem>>, %arg3: memref<16x128xf32, #tpu.memory_space<vmem>>, %arg4: memref<16x128xf32, #tpu.memory_space<vmem>>) attributes {dimension_semantics = [#tpu.dimension_semantics<parallel>], iteration_bounds = array<i64: 1>, scalar_prefetch = 0 : i64, scratch_operands = 0 : i64, tpu.core_type = #tpu.core_type<tc>, window_params = [{transform_indices = @transform_0, window_bounds = array<i64: 1>}, {transform_indices = @transform_1, window_bounds = array<i64: 1>}, {transform_indices = @transform_2, window_bounds = array<i64: 16, 128>}, {transform_indices = @transform_3, window_bounds = array<i64: 16, 128>}]} {
    %c0 = arith.constant 0 : index
    %c0_0 = arith.constant 0 : index
    %0 = vector.load %arg3[%c0, %c0_0] : memref<16x128xf32, #tpu.memory_space<vmem>>, vector<16x128xf32>
    %cst = arith.constant dense<0.000000e+00> : vector<16xf32>
    %1 = vector.multi_reduction <add>, %0, %cst [1] : vector<16x128xf32> to vector<16xf32>
    %2 = vector.shape_cast %1 : vector<16xf32> to vector<16x1xf32>
    %3 = arith.mulf %0, %0 : vector<16x128xf32>
    %cst_1 = arith.constant dense<0.000000e+00> : vector<16xf32>
    %4 = vector.multi_reduction <add>, %3, %cst_1 [1] : vector<16x128xf32> to vector<16xf32>
    %5 = vector.shape_cast %4 : vector<16xf32> to vector<16x1xf32>
    %cst_2 = arith.constant 7.812500e-03 : f32
    %6 = vector.broadcast %cst_2 : f32 to vector<16x1xf32>
    %7 = arith.mulf %2, %6 : vector<16x1xf32>
    %cst_3 = arith.constant 1.280000e+02 : f32
    %8 = vector.broadcast %cst_3 : f32 to vector<16x1xf32>
    %9 = arith.mulf %8, %7 : vector<16x1xf32>
    %10 = arith.mulf %9, %7 : vector<16x1xf32>
    %11 = arith.subf %5, %10 : vector<16x1xf32>
    %cst_4 = arith.constant 0.00787401571 : f32
    %12 = vector.broadcast %cst_4 : f32 to vector<16x1xf32>
    %13 = arith.mulf %11, %12 : vector<16x1xf32>
    %cst_5 = arith.constant 0.000000e+00 : f32
    %14 = vector.broadcast %cst_5 : f32 to vector<16x1xf32>
    %15 = arith.maximumf %13, %14 : vector<16x1xf32>
    %16 = math.sqrt %15 : vector<16x1xf32>
    %c0_6 = arith.constant 0 : index
    %17 = memref.load %arg1[%c0_6] : memref<1xf32, #tpu.memory_space<smem>>
    %c0_7 = arith.constant 0 : index
    %18 = memref.load %arg2[%c0_7] : memref<1xf32, #tpu.memory_space<smem>>
    %cst_8 = arith.constant 9.99999997E-7 : f32
    %19 = vector.broadcast %cst_8 : f32 to vector<16x1xf32>
    %20 = arith.addf %19, %16 : vector<16x1xf32>
    %21 = vector.broadcast %17 : f32 to vector<16x1xf32>
    %22 = arith.divf %21, %20 : vector<16x1xf32>
    %23 = vector.broadcast %7 : vector<16x1xf32> to vector<16x128xf32>
    %24 = arith.subf %0, %23 : vector<16x128xf32>
    %25 = vector.broadcast %22 : vector<16x1xf32> to vector<16x128xf32>
    %26 = arith.mulf %24, %25 : vector<16x128xf32>
    %27 = vector.broadcast %18 : f32 to vector<16x128xf32>
    %28 = arith.addf %26, %27 : vector<16x128xf32>
    %c0_9 = arith.constant 0 : index
    %c0_10 = arith.constant 0 : index
    %29 = vector.load %arg4[%c0_9, %c0_10] : memref<16x128xf32, #tpu.memory_space<vmem>>, vector<16x128xf32>
    tpu.vector_store %arg4[%c0_9, %c0_10], %28 {strides = array<i32>} : memref<16x128xf32, #tpu.memory_space<vmem>>, vector<16x128xf32>,
    return
  }
  func.func @transform_0(%arg0: i32) -> i32 {
    %c0_i32 = arith.constant 0 : i32
    %c0_i32_0 = arith.constant 0 : i32
    return %c0_i32 : i32
  }
  func.func @transform_1(%arg0: i32) -> i32 {
    %c0_i32 = arith.constant 0 : i32
    %c0_i32_0 = arith.constant 0 : i32
    return %c0_i32 : i32
  }
  func.func @transform_2(%arg0: i32) -> (i32, i32) {
    %c0_i32 = arith.constant 0 : i32
    %c0_i32_0 = arith.constant 0 : i32
    return %arg0, %c0_i32 : i32, i32
  }
  func.func @transform_3(%arg0: i32) -> (i32, i32) {
    %c0_i32 = arith.constant 0 : i32
    %c0_i32_0 = arith.constant 0 : i32
    return %arg0, %c0_i32 : i32, i32
  }
}

</mosaic_0001>

<bundles_post_ra>
// kernel: tpu_custom_call.1
= control target key start
LH: loop header
LB: loop body
LE: loop exit
PB: predicated region body
PF: predicated region fallthrough
CT: control target
= control target key end

     0   :  { %10 = vsyncpa [#allocation5], 0  ;;  %s224_s0 = inlined_call_operand.<no memory space> [shape: f32[1], index: 0, kind: input, shape index: {}]   ;;  %s225_s1 = inlined_call_operand.<no memory space> [shape: f32[1], index: 1, kind: input, shape index: {}]   ;;  %s226_s2 = inlined_call_operand.hbm [shape: f32[16,128], index: 2, kind: input, shape index: {}]   ;;  %s227_s3 = inlined_call_operand.hbm [shape: f32[16,128], index: 3, kind: output, shape index: {}]  }
   0x1   :  { %11 = vsyncpa [#allocation6], 0  ;;  %s164_s12 = smov [#allocation4]   ;;  %s116_s16 = scalar_lea.hbm %s226_s2, 256 }
   0x2   :  { %s21_s13 = sshll.u32 %s164_s12, 4  ;;  %p117_p0 = scmp.ne.s32.totalorder %s226_s2, %s116_s16  ;;  %s22_s13 = int_to_ptr.vmem [resolvable:$true] %s21_s13 }
   0x3   :  { %p120_p1 = scmp.lt.u32.totalorder %s116_s16, %s226_s2 }
   0x5   :  { %p122_p2 = pnand %p120_p1, %p117_p0 }
   0x7   :  { %125 = shalt.err (!%p122_p2)
}
   0x8   :  { %s126_s21 = scalar_lea.vmem %s22_s13, 256  ;;  %p131_p4 = scmp.lt.s32.totalorder %s22_s13, %s22_s13 }
   0x9   :  { %p127_p3 = scmp.ne.s32.totalorder %s22_s13, %s126_s21  ;;  %p132_p5 = scmp.lt.s32.totalorder %s126_s21, %s126_s21 }
   0xb   :  { %p133_p6 = por %p132_p5, %p131_p4 }
   0xd   :  { %p134_p7 = pnand %p133_p6, %p127_p3 }
   0xf   :  { %137 = shalt.err (!%p134_p7)
}
  0x10   :  { %s165_s22 = smov 128   ;;  %s166_s23 = smov 8  }
  0x11   :  { %27 = dma.hbm_to_vmem [thread:$0]  %s226_s2, 256, %s22_s13, [#allocation5], %s165_s22, %s165_s22, %s166_s23  }
  0x12   :  { %160 = dma.done.wait [#allocation5], 256  }
  0x13   :  { %161 = vsyncadd [#allocation5], 4294967040  ;;  %v31_v0 = vld [vmem:[#allocation4] sm:$0xff]  ;;  %v32_v2 = vld [vmem:[#allocation4 + $0x8] sm:$0xff]  ;;  %v73_v32 = vstv %s224_s0  ;;  %v82_v36 = vstv %s225_s1  ;;  %s167_s29 = smov [#allocation7]  }
  0x14   :  { %33 = vadd.xlane.f32.xlu0 %v31_v0  ;;  %v37_v1 = vmul.f32 %v31_v0, %v31_v0  ;;  %v38_v3 = vmul.f32 %v32_v2, %v32_v2  ;;  %s92_s30 = sshll.u32 %s167_s29, 4  ;;  %s93_s30 = int_to_ptr.vmem [resolvable:$true] %s92_s30 }
  0x15   :  { %s138_s0 = scalar_lea.vmem %s93_s30, 256  ;;  %p143_p9 = scmp.lt.s32.totalorder %s93_s30, %s93_s30 }
  0x16   :  { %39 = vadd.xlane.f32.xlu1 %v37_v1  ;;  %p139_p8 = scmp.ne.s32.totalorder %s93_s30, %s138_s0  ;;  %p144_p10 = scmp.lt.s32.totalorder %s138_s0, %s138_s0 }
  0x18   :  { %35 = vadd.xlane.f32.xlu0 %v32_v2  ;;  %p145_p11 = por %p144_p10, %p143_p9 }
  0x1a   :  { %41 = vadd.xlane.f32.xlu1 %v38_v3  ;;  %p146_p12 = pnand %p145_p11, %p139_p8 }
  0xa1   :  { %v34_v4 = vpop.xlane.xlu0 %33 }
  0xa2   :  { %v43_v5 = vmul.f32 0.0078125, %v34_v4 }
  0xa3   :  { %v40_v6 = vpop.xlane.xlu1 %39 }
  0xa4   :  { %v45_v7 = vmul.f32 128.0, %v43_v5  ;;  %v78_v34 = vsub.f32 %v31_v0, %v43_v5 }
  0xa5   :  { %v36_v8 = vpop.xlane.xlu0 %35 }
  0xa6   :  { %v44_v9 = vmul.f32 0.0078125, %v36_v8  ;;  %v47_v10 = vmul.f32 %v45_v7, %v43_v5 }
  0xa7   :  { %v42_v13 = vpop.xlane.xlu1 %41 }
  0xa8   :  { %v46_v11 = vmul.f32 128.0, %v44_v9  ;;  %v49_v12 = vsub.f32 %v40_v6, %v47_v10  ;;  %v79_v40 = vsub.f32 %v32_v2, %v44_v9 }
  0xaa   :  { %v51_v14 = vmul.f32 0.007874016, %v49_v12  ;;  %v48_v15 = vmul.f32 %v46_v11, %v44_v9 }
  0xac   :  { %v53_v16 = vmax.f32 %v51_v14, 0.0  ;;  %v50_v17 = vsub.f32 %v42_v13, %v48_v15 }
  0xae   :  { %108 = vrsqrt.f32 %v53_v16  ;;  %v52_v18 = vmul.f32 0.007874016, %v50_v17  ;;  %vm57_vm0 = vcmp.eq.f32.partialorder %v53_v16, inf  ;;  %v60_v22 = vand.u32 2147483648, %v53_v16 }
  0xaf   :  { %vm59_vm1 = vcmp.eq.f32.partialorder %v53_v16, 0.0 }
  0xb0   :  { %v54_v19 = vmax.f32 %v52_v18, 0.0 }
  0xb2   :  { %110 = vrsqrt.f32 %v54_v19  ;;  %vm64_vm2 = vcmp.eq.f32.partialorder %v54_v19, inf  ;;  %v67_v28 = vand.u32 2147483648, %v54_v19  ;;  %vm66_vm3 = vcmp.eq.f32.partialorder %v54_v19, 0.0 }
  0xb8   :  { %v109_v20 = vpop.eup %108 }
  0xb9   :  { %v56_v21 = vmul.f32 %v109_v20, %v53_v16 }
  0xbb   :  { %v58_v23 = vsel %vm57_vm0, %v53_v16, %v56_v21 }
  0xbc   :  { %v61_v24 = vsel %vm59_vm1, %v60_v22, %v58_v23  ;;  %v111_v25 = vpop.eup %110 }
  0xbd   :  { %v71_v26 = vadd.f32 1e-06, %v61_v24  ;;  %v63_v27 = vmul.f32 %v111_v25, %v54_v19 }
  0xbf   :  { %112 = vrcp.f32 %v71_v26  ;;  %v65_v29 = vsel %vm64_vm2, %v54_v19, %v63_v27 }
  0xc0   :  { %v68_v30 = vsel %vm66_vm3, %v67_v28, %v65_v29 }
  0xc1   :  { %v72_v31 = vadd.f32 1e-06, %v68_v30 }
  0xc3   :  { %114 = vrcp.f32 %v72_v31 }
  0xc9   :  { %v113_v33 = vpop.eup %112 }
  0xca   :  { %v75_v35 = vmul.f32 %v113_v33, %v73_v32 }
  0xcc   :  { %v80_v37 = vmul.f32 %v78_v34, %v75_v35 }
  0xcd   :  { %v115_v38 = vpop.eup %114 }
  0xce   :  { %v83_v39 = vadd.f32 %v82_v36, %v80_v37  ;;  %v77_v41 = vmul.f32 %v115_v38, %v73_v32 }
  0xd0   :  { %85 = vst [vmem:[#allocation7] sm:$0xff] %v83_v39  ;;  %v81_v42 = vmul.f32 %v79_v40, %v77_v41 }
  0xd2   :  { %v84_v43 = vadd.f32 %v82_v36, %v81_v42 }
  0xd4   :  { %86 = vst [vmem:[#allocation7 + $0x8] sm:$0xff] %v84_v43 }
  0xd5   :  { %149 = shalt.err (!%p146_p12)
}
  0xd6   :  { %s150_s5 = scalar_lea.hbm %s227_s3, 256 }
  0xd7   :  { %p151_p13 = scmp.ne.s32.totalorder %s227_s3, %s150_s5  ;;  %p154_p0 = scmp.lt.u32.totalorder %s150_s5, %s227_s3 }
  0xd9   :  { %p156_p1 = pnand %p154_p0, %p151_p13 }
  0xdb   :  { %159 = shalt.err (!%p156_p1)
}
  0xdc   :  { %98 = dma.vmem_to_hbm [thread:$0]  %s93_s30, 256, %s227_s3, [#allocation6], %s165_s22, %s165_s22, %s166_s23  }
  0xdd   :  { %162 = dma.done.wait [#allocation6], 256  }
  0xde   :  { %163 = vsyncadd [#allocation6], 4294967040 }
  0xdf   :  { %102 = vsyncpa [#allocation5], 1 }
  0xe0   :  { %103 = vsyncpa [#allocation6], 1 }

</bundles_post_ra>
